<compile_context>
chip_gen: v6e
topology: v6e:2x2x1
jax: 0.10.0
libtpu: 0.0.40
codegen_flags: <defaults>
</compile_context>

<pallas_src>
import functools

import jax
import jax.numpy as jnp
from jax import lax
from jax.experimental import pallas as pl
from jax.experimental.pallas import tpu as pltpu


# ----------------------------------------------------------------------------
# Kernel A: conv as ONE stacked matmul + per-batch BN partial sums.
# ----------------------------------------------------------------------------
def _conv_stats_kernel(x_ref, w_ref, y_ref, sum_ref, ssq_ref, xs_ref, *,
                       kh, kw, c_in, w_pad, p_flat, out_h, out_w, stride):
    """One batch element per grid step ("parallel" over batch).

    x_ref   : (1, C_in, XL)           bf16  zero-padded, flattened image (+tail pad)
    w_ref   : (C_out, KH*KW*C_in)     bf16  taps stacked along the K axis
    y_ref   : (1, C_out, OH*OW)       bf16  compact conv output (valid window)
    sum_ref : (1, C_out, 1)           f32   per-batch partial sum
    ssq_ref : (1, C_out, 1)           f32   per-batch partial sum of squares
    xs_ref  : (KH*KW*C_in, P)         bf16  VMEM scratch: stacked shifted slices
    """
    # Stage the KH*KW shifted lane-slices into one stacked (K_total, P) operand
    # so the conv is a single K = KH*KW*C_in matmul (one MXU push instead of 9).
    for i in range(kh):
        for j in range(kw):
            t = i * kw + j
            shift = i * w_pad + j
            xs_ref[t * c_in:(t + 1) * c_in, :] = x_ref[0, :, shift:shift + p_flat]

    acc = jnp.dot(w_ref[...], xs_ref[...],
                  preferred_element_type=jnp.float32)          # (C_out, P) f32

    # Compact to the valid output window -> lane-dense (C_out, OH*OW) slab.
    rows = []
    for r in range(out_h):
        base = r * stride * w_pad
        if stride == 1:
            rows.append(acc[:, base:base + out_w])
        else:
            rows.append(acc[:, base:base + (out_w - 1) * stride + 1:stride])
    z = jnp.concatenate(rows, axis=1)                          # (C_out, OH*OW)

    y_ref[0, :, :] = z.astype(y_ref.dtype)
    sum_ref[0, :, :] = jnp.sum(z, axis=1, keepdims=True)
    ssq_ref[0, :, :] = jnp.sum(z * z, axis=1, keepdims=True)


# ----------------------------------------------------------------------------
# Kernel B: reduce per-batch partials -> per-channel scale/shift, then a pure
# pointwise FMA + tanh over the lane-dense compact slab.
# ----------------------------------------------------------------------------
def _bn_tanh_kernel(y_ref, sum_ref, ssq_ref, gamma_ref, beta_ref, out_ref, *,
                    count, eps):
    """y_ref: (1, C_out, OH*OW) bf16; sum/ssq: (N, C_out, 1) f32 partials."""
    inv_n = 1.0 / count
    mean = jnp.sum(sum_ref[...], axis=0) * inv_n               # (C_out, 1)
    ex2 = jnp.sum(ssq_ref[...], axis=0) * inv_n                # (C_out, 1)
    var = jnp.maximum(ex2 - mean * mean, 0.0)                  # biased variance
    scale = gamma_ref[...] * lax.rsqrt(var + eps)              # (C_out, 1)
    shift = beta_ref[...] - mean * scale                       # (C_out, 1)

    y = y_ref[0, :, :].astype(jnp.float32)                     # (C_out, OH*OW)
    out_ref[0, :, :] = jnp.tanh(y * scale + shift)             # lane-dense store


# ----------------------------------------------------------------------------
# Wrapper.
# ----------------------------------------------------------------------------
@functools.partial(jax.jit, static_argnames=("stride", "padding"))
def conv2d_bn_tanh(x, weight, gamma, beta, *, stride=1, padding=0):
    """Forward of Conv2D(in, out, k, padding, stride, bias=False, 'tanh', bn=True).

    x:      (N, C_in, H, W)        f32, NCHW (PyTorch layout)
    weight: (C_out, C_in, KH, KW)  f32 (PyTorch conv weight layout)
    gamma, beta: (C_out,)          f32 BatchNorm affine parameters
    returns (N, C_out, OH, OW)     f32, NCHW
    """
    n, c_in, h, w = x.shape
    c_out, _, kh, kw = weight.shape
    h_pad, w_pad = h + 2 * padding, w + 2 * padding
    out_h = (h_pad - kh) // stride + 1
    out_w = (w_pad - kw) // stride + 1
    p_flat = h_pad * w_pad                       # padded-grid positions (lanes)
    out_p = out_h * out_w                        # compact valid-window positions
    k_total = kh * kw * c_in
    max_shift = (kh - 1) * w_pad + (kw - 1)
    x_len = ((p_flat + max_shift + 127) // 128) * 128

    # Zero-pad spatially, flatten the spatial grid (layout-preserving), pad the
    # tail so every shifted in-kernel slice stays in bounds, cast to bf16 once.
    x_p = jnp.pad(x, ((0, 0), (0, 0), (padding, padding), (padding, padding)))
    x_flat = x_p.reshape(n, c_in, p_flat)
    x_flat = jnp.pad(x_flat, ((0, 0), (0, 0), (0, x_len - p_flat)))
    x_flat = x_flat.astype(jnp.bfloat16)

    # Weight (C_out, C_in, KH, KW) -> (C_out, KH*KW*C_in), (tap, channel) order
    # matching the kernel's stacked operand.
    w_stacked = weight.transpose(0, 2, 3, 1).reshape(c_out, k_total)
    w_stacked = w_stacked.astype(jnp.bfloat16)

    conv_flops = 2 * n * c_out * k_total * p_flat
    conv_bytes = (x_flat.size * 2 + n * w_stacked.size * 2
                  + n * c_out * out_p * 2 + 2 * n * c_out * 4)

    # NOTE: per-step blocks are tiny here; when scaling up, tile the flattened
    # spatial axis (multiples of 128 + halo) and re-derive block sizes against
    # 64 MiB VMEM (v7x) / 128 MiB (v5e/v6e), remembering double-buffering.
    y_c, sums, ssqs = pl.pallas_call(
        functools.partial(_conv_stats_kernel, kh=kh, kw=kw, c_in=c_in,
                          w_pad=w_pad, p_flat=p_flat, out_h=out_h,
                          out_w=out_w, stride=stride),
        out_shape=(
            jax.ShapeDtypeStruct((n, c_out, out_p), jnp.bfloat16),
            jax.ShapeDtypeStruct((n, c_out, 1), jnp.float32),
            jax.ShapeDtypeStruct((n, c_out, 1), jnp.float32),
        ),
        grid=(n,),
        in_specs=[
            pl.BlockSpec((1, c_in, x_len), lambda i: (i, 0, 0)),
            pl.BlockSpec((c_out, k_total), lambda i: (0, 0)),
        ],
        out_specs=(
            pl.BlockSpec((1, c_out, out_p), lambda i: (i, 0, 0)),
            pl.BlockSpec((1, c_out, 1), lambda i: (i, 0, 0)),
            pl.BlockSpec((1, c_out, 1), lambda i: (i, 0, 0)),
        ),
        scratch_shapes=[pltpu.VMEM((k_total, p_flat), jnp.bfloat16)],
        compiler_params=pltpu.CompilerParams(
            # Per-batch partial stats -> no grid-resident accumulator, so the
            # batch axis is fully parallel (shards across 2 TCs on v7x).
            dimension_semantics=("parallel",)),
        cost_estimate=pl.CostEstimate(
            flops=conv_flops, transcendentals=0, bytes_accessed=conv_bytes),
    )(x_flat, w_stacked)

    bn_bytes = (n * c_out * out_p * 2 + n * c_out * out_p * 4
                + (2 * n + 2) * c_out * 4)
    out_flat = pl.pallas_call(
        functools.partial(_bn_tanh_kernel, count=float(n * out_h * out_w),
                          eps=1e-5),
        out_shape=jax.ShapeDtypeStruct((n, c_out, out_p), jnp.float32),
        grid=(n,),
        in_specs=[
            pl.BlockSpec((1, c_out, out_p), lambda i: (i, 0, 0)),
            pl.BlockSpec((n, c_out, 1), lambda i: (0, 0, 0)),
            pl.BlockSpec((n, c_out, 1), lambda i: (0, 0, 0)),
            pl.BlockSpec((c_out, 1), lambda i: (0, 0)),
            pl.BlockSpec((c_out, 1), lambda i: (0, 0)),
        ],
        out_specs=pl.BlockSpec((1, c_out, out_p), lambda i: (i, 0, 0)),
        compiler_params=pltpu.CompilerParams(
            dimension_semantics=("parallel",)),
        cost_estimate=pl.CostEstimate(
            flops=4 * n * c_out * out_p + 10 * n * c_out,
            transcendentals=n * c_out * out_p,
            bytes_accessed=bn_bytes),
    )(y_c, sums, ssqs, gamma.reshape(c_out, 1), beta.reshape(c_out, 1))

    # Layout-preserving reshape of the lane-dense slab back to NCHW.
    return out_flat.reshape(n, c_out, out_h, out_w)


# ----------------------------------------------------------------------------
# Pure-JAX reference (correctness check).
# ----------------------------------------------------------------------------
def reference(x, weight, gamma, beta, *, stride=1, padding=0,
              conv_dtype=jnp.float32, y_dtype=jnp.float32):
    y = lax.conv_general_dilated(
        x.astype(conv_dtype), weight.astype(conv_dtype),
        window_strides=(stride, stride),
        padding=[(padding, padding), (padding, padding)],
        dimension_numbers=("NCHW", "OIHW", "NCHW"),
        preferred_element_type=jnp.float32,
    )
    mean = jnp.mean(y, axis=(0, 2, 3), keepdims=True)
    var = jnp.mean((y - mean) ** 2, axis=(0, 2, 3), keepdims=True)
    y = y.astype(y_dtype).astype(jnp.float32)   # model the bf16 intermediate
    scale = gamma.reshape(1, -1, 1, 1) * lax.rsqrt(var + 1e-5)
    shift = beta.reshape(1, -1, 1, 1) - mean * scale
    return jnp.tanh(y * scale + shift)


if __name__ == "__main__":
    # Conv2D(in_channels=4, out_channels=8, kernel_size=3, padding=1, stride=1,
    #        bias=False, activation='tanh', dropout=0, bn=True)
    N, C_IN, H, W = 2, 4, 16, 16
    C_OUT, KH, KW = 8, 3, 3
    STRIDE, PAD = 1, 1

    key = jax.random.PRNGKey(0)
    kx, kw_ = jax.random.split(key)
    x = jax.random.normal(kx, (N, C_IN, H, W), dtype=jnp.float32)
    weight = jax.random.normal(kw_, (C_OUT, C_IN, KH, KW), dtype=jnp.float32) * 0.1
    gamma = jnp.ones((C_OUT,), dtype=jnp.float32)   # BatchNorm default weight
    beta = jnp.zeros((C_OUT,), dtype=jnp.float32)   # BatchNorm default bias

    out = conv2d_bn_tanh(x, weight, gamma, beta, stride=STRIDE, padding=PAD)
    out = jax.block_until_ready(out)
    assert out.shape == (N, C_OUT, H, W), out.shape

    # Tight check against a reference matching the kernel's precision choices
    # (bf16 MXU operands, f32 accumulation/stats, bf16 conv intermediate).
    ref_matched = reference(x, weight, gamma, beta, stride=STRIDE, padding=PAD,
                            conv_dtype=jnp.bfloat16, y_dtype=jnp.bfloat16)
    err = float(jnp.max(jnp.abs(out - ref_matched)))
    assert err < 3e-3, err

    # Loose sanity check against the full-f32 PyTorch-equivalent math.
    ref_f32 = reference(x, weight, gamma, beta, stride=STRIDE, padding=PAD)
    err32 = float(jnp.max(jnp.abs(out - ref_f32)))
    assert err32 < 5e-2, err32

    print("KERNEL_OK")
</pallas_src>

<mosaic_0001>
module attributes {stable_mosaic.version = 11 : i64} {
  func.func @_conv_stats_kernel(%arg0: i32, %arg1: memref<1x4x384xbf16, #tpu.memory_space<vmem>>, %arg2: memref<8x36xbf16, #tpu.memory_space<vmem>>, %arg3: memref<1x8x256xbf16, #tpu.memory_space<vmem>>, %arg4: memref<1x8x1xf32, #tpu.memory_space<vmem>>, %arg5: memref<1x8x1xf32, #tpu.memory_space<vmem>>, %arg6: memref<36x324xbf16, #tpu.memory_space<vmem>>) attributes {dimension_semantics = [#tpu.dimension_semantics<parallel>], iteration_bounds = array<i64: 2>, scalar_prefetch = 0 : i64, scratch_operands = 1 : i64, tpu.core_type = #tpu.core_type<tc>, window_params = [{transform_indices = @transform_0, window_bounds = array<i64: 1, 4, 384>}, {pipeline_mode = #tpu.pipeline_mode<synchronous>, transform_indices = @transform_1, window_bounds = array<i64: 8, 36>}, {transform_indices = @transform_2, window_bounds = array<i64: 1, 8, 256>}, {transform_indices = @transform_3, window_bounds = array<i64: 1, 8, 1>}, {transform_indices = @transform_4, window_bounds = array<i64: 1, 8, 1>}]} {
    %c0 = arith.constant 0 : index
    %c0_0 = arith.constant 0 : index
    %c0_1 = arith.constant 0 : index
    %0 = vector.load %arg1[%c0, %c0_0, %c0_1] : memref<1x4x384xbf16, #tpu.memory_space<vmem>>, vector<1x4x324xbf16>
    %1 = vector.shape_cast %0 : vector<1x4x324xbf16> to vector<4x324xbf16>
    %c0_2 = arith.constant 0 : index
    %c0_3 = arith.constant 0 : index
    %2 = vector.load %arg6[%c0_2, %c0_3] : memref<36x324xbf16, #tpu.memory_space<vmem>>, vector<4x324xbf16>
    tpu.vector_store %arg6[%c0_2, %c0_3], %1 {strides = array<i32>} : memref<36x324xbf16, #tpu.memory_space<vmem>>, vector<4x324xbf16>,
    %c0_4 = arith.constant 0 : index
    %c0_5 = arith.constant 0 : index
    %c1 = arith.constant 1 : index
    %3 = vector.load %arg1[%c0_4, %c0_5, %c1] : memref<1x4x384xbf16, #tpu.memory_space<vmem>>, vector<1x4x324xbf16>
    %4 = vector.shape_cast %3 : vector<1x4x324xbf16> to vector<4x324xbf16>
    %c4 = arith.constant 4 : index
    %c0_6 = arith.constant 0 : index
    %5 = vector.load %arg6[%c4, %c0_6] : memref<36x324xbf16, #tpu.memory_space<vmem>>, vector<4x324xbf16>
    tpu.vector_store %arg6[%c4, %c0_6], %4 {strides = array<i32>} : memref<36x324xbf16, #tpu.memory_space<vmem>>, vector<4x324xbf16>,
    %c0_7 = arith.constant 0 : index
    %c0_8 = arith.constant 0 : index
    %c2 = arith.constant 2 : index
    %6 = vector.load %arg1[%c0_7, %c0_8, %c2] : memref<1x4x384xbf16, #tpu.memory_space<vmem>>, vector<1x4x324xbf16>
    %7 = vector.shape_cast %6 : vector<1x4x324xbf16> to vector<4x324xbf16>
    %c8 = arith.constant 8 : index
    %c0_9 = arith.constant 0 : index
    %8 = vector.load %arg6[%c8, %c0_9] : memref<36x324xbf16, #tpu.memory_space<vmem>>, vector<4x324xbf16>
    tpu.vector_store %arg6[%c8, %c0_9], %7 {strides = array<i32>} : memref<36x324xbf16, #tpu.memory_space<vmem>>, vector<4x324xbf16>,
    %c0_10 = arith.constant 0 : index
    %c0_11 = arith.constant 0 : index
    %c18 = arith.constant 18 : index
    %9 = vector.load %arg1[%c0_10, %c0_11, %c18] : memref<1x4x384xbf16, #tpu.memory_space<vmem>>, vector<1x4x324xbf16>
    %10 = vector.shape_cast %9 : vector<1x4x324xbf16> to vector<4x324xbf16>
    %c12 = arith.constant 12 : index
    %c0_12 = arith.constant 0 : index
    %11 = vector.load %arg6[%c12, %c0_12] : memref<36x324xbf16, #tpu.memory_space<vmem>>, vector<4x324xbf16>
    tpu.vector_store %arg6[%c12, %c0_12], %10 {strides = array<i32>} : memref<36x324xbf16, #tpu.memory_space<vmem>>, vector<4x324xbf16>,
    %c0_13 = arith.constant 0 : index
    %c0_14 = arith.constant 0 : index
    %c19 = arith.constant 19 : index
    %12 = vector.load %arg1[%c0_13, %c0_14, %c19] : memref<1x4x384xbf16, #tpu.memory_space<vmem>>, vector<1x4x324xbf16>
    %13 = vector.shape_cast %12 : vector<1x4x324xbf16> to vector<4x324xbf16>
    %c16 = arith.constant 16 : index
    %c0_15 = arith.constant 0 : index
    %14 = vector.load %arg6[%c16, %c0_15] : memref<36x324xbf16, #tpu.memory_space<vmem>>, vector<4x324xbf16>
    tpu.vector_store %arg6[%c16, %c0_15], %13 {strides = array<i32>} : memref<36x324xbf16, #tpu.memory_space<vmem>>, vector<4x324xbf16>,
    %c0_16 = arith.constant 0 : index
    %c0_17 = arith.constant 0 : index
    %c20 = arith.constant 20 : index
    %15 = vector.load %arg1[%c0_16, %c0_17, %c20] : memref<1x4x384xbf16, #tpu.memory_space<vmem>>, vector<1x4x324xbf16>
    %16 = vector.shape_cast %15 : vector<1x4x324xbf16> to vector<4x324xbf16>
    %c20_18 = arith.constant 20 : index
    %c0_19 = arith.constant 0 : index
    %17 = vector.load %arg6[%c20_18, %c0_19] : memref<36x324xbf16, #tpu.memory_space<vmem>>, vector<4x324xbf16>
    tpu.vector_store %arg6[%c20_18, %c0_19], %16 {strides = array<i32>} : memref<36x324xbf16, #tpu.memory_space<vmem>>, vector<4x324xbf16>,
    %c0_20 = arith.constant 0 : index
    %c0_21 = arith.constant 0 : index
    %c36 = arith.constant 36 : index
    %18 = vector.load %arg1[%c0_20, %c0_21, %c36] : memref<1x4x384xbf16, #tpu.memory_space<vmem>>, vector<1x4x324xbf16>
    %19 = vector.shape_cast %18 : vector<1x4x324xbf16> to vector<4x324xbf16>
    %c24 = arith.constant 24 : index
    %c0_22 = arith.constant 0 : index
    %20 = vector.load %arg6[%c24, %c0_22] : memref<36x324xbf16, #tpu.memory_space<vmem>>, vector<4x324xbf16>
    tpu.vector_store %arg6[%c24, %c0_22], %19 {strides = array<i32>} : memref<36x324xbf16, #tpu.memory_space<vmem>>, vector<4x324xbf16>,
    %c0_23 = arith.constant 0 : index
    %c0_24 = arith.constant 0 : index
    %c37 = arith.constant 37 : index
    %21 = vector.load %arg1[%c0_23, %c0_24, %c37] : memref<1x4x384xbf16, #tpu.memory_space<vmem>>, vector<1x4x324xbf16>
    %22 = vector.shape_cast %21 : vector<1x4x324xbf16> to vector<4x324xbf16>
    %c28 = arith.constant 28 : index
    %c0_25 = arith.constant 0 : index
    %23 = vector.load %arg6[%c28, %c0_25] : memref<36x324xbf16, #tpu.memory_space<vmem>>, vector<4x324xbf16>
    tpu.vector_store %arg6[%c28, %c0_25], %22 {strides = array<i32>} : memref<36x324xbf16, #tpu.memory_space<vmem>>, vector<4x324xbf16>,
    %c0_26 = arith.constant 0 : index
    %c0_27 = arith.constant 0 : index
    %c38 = arith.constant 38 : index
    %24 = vector.load %arg1[%c0_26, %c0_27, %c38] : memref<1x4x384xbf16, #tpu.memory_space<vmem>>, vector<1x4x324xbf16>
    %25 = vector.shape_cast %24 : vector<1x4x324xbf16> to vector<4x324xbf16>
    %c32 = arith.constant 32 : index
    %c0_28 = arith.constant 0 : index
    %26 = vector.load %arg6[%c32, %c0_28] : memref<36x324xbf16, #tpu.memory_space<vmem>>, vector<4x324xbf16>
    tpu.vector_store %arg6[%c32, %c0_28], %25 {strides = array<i32>} : memref<36x324xbf16, #tpu.memory_space<vmem>>, vector<4x324xbf16>,
    %c0_29 = arith.constant 0 : index
    %c0_30 = arith.constant 0 : index
    %27 = vector.load %arg2[%c0_29, %c0_30] : memref<8x36xbf16, #tpu.memory_space<vmem>>, vector<8x36xbf16>
    %c0_31 = arith.constant 0 : index
    %c0_32 = arith.constant 0 : index
    %28 = vector.load %arg6[%c0_31, %c0_32] : memref<36x324xbf16, #tpu.memory_space<vmem>>, vector<36x324xbf16>
    %cst = arith.constant dense<0.000000e+00> : vector<8x324xf32>
    %29 = tpu.matmul %27, %28, %cst {dimension_numbers = #tpu.dot_dimension_numbers<[1], [0], [0], [1], [0, 0, 1, 1], [], []>} : vector<8x36xbf16>, vector<36x324xbf16>, vector<8x324xf32> -> vector<8x324xf32>
    %30 = vector.extract_strided_slice %29 {offsets = [0, 0], sizes = [8, 16], strides = [1, 1]} : vector<8x324xf32> to vector<8x16xf32>
    %31 = vector.extract_strided_slice %29 {offsets = [0, 18], sizes = [8, 16], strides = [1, 1]} : vector<8x324xf32> to vector<8x16xf32>
    %32 = vector.extract_strided_slice %29 {offsets = [0, 36], sizes = [8, 16], strides = [1, 1]} : vector<8x324xf32> to vector<8x16xf32>
    %33 = vector.extract_strided_slice %29 {offsets = [0, 54], sizes = [8, 16], strides = [1, 1]} : vector<8x324xf32> to vector<8x16xf32>
    %34 = vector.extract_strided_slice %29 {offsets = [0, 72], sizes = [8, 16], strides = [1, 1]} : vector<8x324xf32> to vector<8x16xf32>
    %35 = vector.extract_strided_slice %29 {offsets = [0, 90], sizes = [8, 16], strides = [1, 1]} : vector<8x324xf32> to vector<8x16xf32>
    %36 = vector.extract_strided_slice %29 {offsets = [0, 108], sizes = [8, 16], strides = [1, 1]} : vector<8x324xf32> to vector<8x16xf32>
    %37 = vector.extract_strided_slice %29 {offsets = [0, 126], sizes = [8, 16], strides = [1, 1]} : vector<8x324xf32> to vector<8x16xf32>
    %38 = vector.extract_strided_slice %29 {offsets = [0, 144], sizes = [8, 16], strides = [1, 1]} : vector<8x324xf32> to vector<8x16xf32>
    %39 = vector.extract_strided_slice %29 {offsets = [0, 162], sizes = [8, 16], strides = [1, 1]} : vector<8x324xf32> to vector<8x16xf32>
    %40 = vector.extract_strided_slice %29 {offsets = [0, 180], sizes = [8, 16], strides = [1, 1]} : vector<8x324xf32> to vector<8x16xf32>
    %41 = vector.extract_strided_slice %29 {offsets = [0, 198], sizes = [8, 16], strides = [1, 1]} : vector<8x324xf32> to vector<8x16xf32>
    %42 = vector.extract_strided_slice %29 {offsets = [0, 216], sizes = [8, 16], strides = [1, 1]} : vector<8x324xf32> to vector<8x16xf32>
    %43 = vector.extract_strided_slice %29 {offsets = [0, 234], sizes = [8, 16], strides = [1, 1]} : vector<8x324xf32> to vector<8x16xf32>
    %44 = vector.extract_strided_slice %29 {offsets = [0, 252], sizes = [8, 16], strides = [1, 1]} : vector<8x324xf32> to vector<8x16xf32>
    %45 = vector.extract_strided_slice %29 {offsets = [0, 270], sizes = [8, 16], strides = [1, 1]} : vector<8x324xf32> to vector<8x16xf32>
    %46 = tpu.concatenate %30, %31, %32, %33, %34, %35, %36, %37, %38, %39, %40, %41, %42, %43, %44, %45 in 1 : vector<8x16xf32>, vector<8x16xf32>, vector<8x16xf32>, vector<8x16xf32>, vector<8x16xf32>, vector<8x16xf32>, vector<8x16xf32>, vector<8x16xf32>, vector<8x16xf32>, vector<8x16xf32>, vector<8x16xf32>, vector<8x16xf32>, vector<8x16xf32>, vector<8x16xf32>, vector<8x16xf32>, vector<8x16xf32> -> vector<8x256xf32>
    %47 = arith.truncf %46 : vector<8x256xf32> to vector<8x256xbf16>
    %c0_33 = arith.constant 0 : index
    %c0_34 = arith.constant 0 : index
    %c0_35 = arith.constant 0 : index
    %48 = vector.load %arg3[%c0_33, %c0_34, %c0_35] : memref<1x8x256xbf16, #tpu.memory_space<vmem>>, vector<1x8x256xbf16>
    %49 = vector.shape_cast %48 : vector<1x8x256xbf16> to vector<8x256xbf16>
    %50 = vector.shape_cast %47 : vector<8x256xbf16> to vector<1x8x256xbf16>
    tpu.vector_store %arg3[%c0_33, %c0_34, %c0_35], %50 {strides = array<i32>} : memref<1x8x256xbf16, #tpu.memory_space<vmem>>, vector<1x8x256xbf16>,
    %cst_36 = arith.constant dense<0.000000e+00> : vector<8xf32>
    %51 = vector.multi_reduction <add>, %46, %cst_36 [1] : vector<8x256xf32> to vector<8xf32>
    %52 = vector.shape_cast %51 : vector<8xf32> to vector<8x1xf32>
    %c0_37 = arith.constant 0 : index
    %c0_38 = arith.constant 0 : index
    %c0_39 = arith.constant 0 : index
    %53 = vector.load %arg4[%c0_37, %c0_38, %c0_39] : memref<1x8x1xf32, #tpu.memory_space<vmem>>, vector<1x8x1xf32>
    %54 = vector.shape_cast %53 : vector<1x8x1xf32> to vector<8x1xf32>
    %55 = vector.shape_cast %52 : vector<8x1xf32> to vector<1x8x1xf32>
    tpu.vector_store %arg4[%c0_37, %c0_38, %c0_39], %55 {strides = array<i32>} : memref<1x8x1xf32, #tpu.memory_space<vmem>>, vector<1x8x1xf32>,
    %56 = arith.mulf %46, %46 : vector<8x256xf32>
    %cst_40 = arith.constant dense<0.000000e+00> : vector<8xf32>
    %57 = vector.multi_reduction <add>, %56, %cst_40 [1] : vector<8x256xf32> to vector<8xf32>
    %58 = vector.shape_cast %57 : vector<8xf32> to vector<8x1xf32>
    %c0_41 = arith.constant 0 : index
    %c0_42 = arith.constant 0 : index
    %c0_43 = arith.constant 0 : index
    %59 = vector.load %arg5[%c0_41, %c0_42, %c0_43] : memref<1x8x1xf32, #tpu.memory_space<vmem>>, vector<1x8x1xf32>
    %60 = vector.shape_cast %59 : vector<1x8x1xf32> to vector<8x1xf32>
    %61 = vector.shape_cast %58 : vector<8x1xf32> to vector<1x8x1xf32>
    tpu.vector_store %arg5[%c0_41, %c0_42, %c0_43], %61 {strides = array<i32>} : memref<1x8x1xf32, #tpu.memory_space<vmem>>, vector<1x8x1xf32>,
    return
  }
  func.func @transform_0(%arg0: i32) -> (i32, i32, i32) {
    %c0_i32 = arith.constant 0 : i32
    %c0_i32_0 = arith.constant 0 : i32
    %c0_i32_1 = arith.constant 0 : i32
    return %arg0, %c0_i32, %c0_i32_0 : i32, i32, i32
  }
  func.func @transform_1(%arg0: i32) -> (i32, i32) {
    %c0_i32 = arith.constant 0 : i32
    %c0_i32_0 = arith.constant 0 : i32
    %c0_i32_1 = arith.constant 0 : i32
    return %c0_i32, %c0_i32_0 : i32, i32
  }
  func.func @transform_2(%arg0: i32) -> (i32, i32, i32) {
    %c0_i32 = arith.constant 0 : i32
    %c0_i32_0 = arith.constant 0 : i32
    %c0_i32_1 = arith.constant 0 : i32
    return %arg0, %c0_i32, %c0_i32_0 : i32, i32, i32
  }
  func.func @transform_3(%arg0: i32) -> (i32, i32, i32) {
    %c0_i32 = arith.constant 0 : i32
    %c0_i32_0 = arith.constant 0 : i32
    %c0_i32_1 = arith.constant 0 : i32
    return %arg0, %c0_i32, %c0_i32_0 : i32, i32, i32
  }
  func.func @transform_4(%arg0: i32) -> (i32, i32, i32) {
    %c0_i32 = arith.constant 0 : i32
    %c0_i32_0 = arith.constant 0 : i32
    %c0_i32_1 = arith.constant 0 : i32
    return %arg0, %c0_i32, %c0_i32_0 : i32, i32, i32
  }
}

module attributes {stable_mosaic.version = 11 : i64} {
  func.func @_bn_tanh_kernel(%arg0: i32, %arg1: memref<1x8x256xbf16, #tpu.memory_space<vmem>>, %arg2: memref<2x8x1xf32, #tpu.memory_space<vmem>>, %arg3: memref<2x8x1xf32, #tpu.memory_space<vmem>>, %arg4: memref<8x1xf32, #tpu.memory_space<vmem>>, %arg5: memref<8x1xf32, #tpu.memory_space<vmem>>, %arg6: memref<1x8x256xf32, #tpu.memory_space<vmem>>) attributes {dimension_semantics = [#tpu.dimension_semantics<parallel>], iteration_bounds = array<i64: 2>, scalar_prefetch = 0 : i64, scratch_operands = 0 : i64, tpu.core_type = #tpu.core_type<tc>, window_params = [{transform_indices = @transform_0, window_bounds = array<i64: 1, 8, 256>}, {pipeline_mode = #tpu.pipeline_mode<synchronous>, transform_indices = @transform_1, window_bounds = array<i64: 2, 8, 1>}, {pipeline_mode = #tpu.pipeline_mode<synchronous>, transform_indices = @transform_2, window_bounds = array<i64: 2, 8, 1>}, {pipeline_mode = #tpu.pipeline_mode<synchronous>, transform_indices = @transform_3, window_bounds = array<i64: 8, 1>}, {pipeline_mode = #tpu.pipeline_mode<synchronous>, transform_indices = @transform_4, window_bounds = array<i64: 8, 1>}, {transform_indices = @transform_5, window_bounds = array<i64: 1, 8, 256>}]} {
    %c0 = arith.constant 0 : index
    %c0_0 = arith.constant 0 : index
    %c0_1 = arith.constant 0 : index
    %0 = vector.load %arg2[%c0, %c0_0, %c0_1] : memref<2x8x1xf32, #tpu.memory_space<vmem>>, vector<2x8x1xf32>
    %cst = arith.constant dense<0.000000e+00> : vector<8x1xf32>
    %1 = vector.multi_reduction <add>, %0, %cst [0] : vector<2x8x1xf32> to vector<8x1xf32>
    %cst_2 = arith.constant 0.001953125 : f32
    %2 = vector.broadcast %cst_2 : f32 to vector<8x1xf32>
    %3 = arith.mulf %1, %2 : vector<8x1xf32>
    %c0_3 = arith.constant 0 : index
    %c0_4 = arith.constant 0 : index
    %c0_5 = arith.constant 0 : index
    %4 = vector.load %arg3[%c0_3, %c0_4, %c0_5] : memref<2x8x1xf32, #tpu.memory_space<vmem>>, vector<2x8x1xf32>
    %cst_6 = arith.constant dense<0.000000e+00> : vector<8x1xf32>
    %5 = vector.multi_reduction <add>, %4, %cst_6 [0] : vector<2x8x1xf32> to vector<8x1xf32>
    %cst_7 = arith.constant 0.001953125 : f32
    %6 = vector.broadcast %cst_7 : f32 to vector<8x1xf32>
    %7 = arith.mulf %5, %6 : vector<8x1xf32>
    %8 = arith.mulf %3, %3 : vector<8x1xf32>
    %9 = arith.subf %7, %8 : vector<8x1xf32>
    %cst_8 = arith.constant 0.000000e+00 : f32
    %10 = vector.broadcast %cst_8 : f32 to vector<8x1xf32>
    %11 = arith.maximumf %9, %10 : vector<8x1xf32>
    %c0_9 = arith.constant 0 : index
    %c0_10 = arith.constant 0 : index
    %12 = vector.load %arg4[%c0_9, %c0_10] : memref<8x1xf32, #tpu.memory_space<vmem>>, vector<8x1xf32>
    %cst_11 = arith.constant 9.99999974E-6 : f32
    %13 = vector.broadcast %cst_11 : f32 to vector<8x1xf32>
    %14 = arith.addf %11, %13 : vector<8x1xf32>
    %15 = math.rsqrt %14 : vector<8x1xf32>
    %16 = arith.mulf %12, %15 : vector<8x1xf32>
    %c0_12 = arith.constant 0 : index
    %c0_13 = arith.constant 0 : index
    %17 = vector.load %arg5[%c0_12, %c0_13] : memref<8x1xf32, #tpu.memory_space<vmem>>, vector<8x1xf32>
    %18 = arith.mulf %3, %16 : vector<8x1xf32>
    %19 = arith.subf %17, %18 : vector<8x1xf32>
    %c0_14 = arith.constant 0 : index
    %c0_15 = arith.constant 0 : index
    %c0_16 = arith.constant 0 : index
    %20 = vector.load %arg1[%c0_14, %c0_15, %c0_16] : memref<1x8x256xbf16, #tpu.memory_space<vmem>>, vector<1x8x256xbf16>
    %21 = vector.shape_cast %20 : vector<1x8x256xbf16> to vector<8x256xbf16>
    %22 = arith.extf %21 : vector<8x256xbf16> to vector<8x256xf32>
    %23 = vector.broadcast %16 : vector<8x1xf32> to vector<8x256xf32>
    %24 = arith.mulf %22, %23 : vector<8x256xf32>
    %25 = vector.broadcast %19 : vector<8x1xf32> to vector<8x256xf32>
    %26 = arith.addf %24, %25 : vector<8x256xf32>
    %27 = math.tanh %26 : vector<8x256xf32>
    %c0_17 = arith.constant 0 : index
    %c0_18 = arith.constant 0 : index
    %c0_19 = arith.constant 0 : index
    %28 = vector.load %arg6[%c0_17, %c0_18, %c0_19] : memref<1x8x256xf32, #tpu.memory_space<vmem>>, vector<1x8x256xf32>
    %29 = vector.shape_cast %28 : vector<1x8x256xf32> to vector<8x256xf32>
    %30 = vector.shape_cast %27 : vector<8x256xf32> to vector<1x8x256xf32>
    tpu.vector_store %arg6[%c0_17, %c0_18, %c0_19], %30 {strides = array<i32>} : memref<1x8x256xf32, #tpu.memory_space<vmem>>, vector<1x8x256xf32>,
    return
  }
  func.func @transform_0(%arg0: i32) -> (i32, i32, i32) {
    %c0_i32 = arith.constant 0 : i32
    %c0_i32_0 = arith.constant 0 : i32
    %c0_i32_1 = arith.constant 0 : i32
    return %arg0, %c0_i32, %c0_i32_0 : i32, i32, i32
  }
  func.func @transform_1(%arg0: i32) -> (i32, i32, i32) {
    %c0_i32 = arith.constant 0 : i32
    %c0_i32_0 = arith.constant 0 : i32
    %c0_i32_1 = arith.constant 0 : i32
    %c0_i32_2 = arith.constant 0 : i32
    return %c0_i32, %c0_i32_0, %c0_i32_1 : i32, i32, i32
  }
  func.func @transform_2(%arg0: i32) -> (i32, i32, i32) {
    %c0_i32 = arith.constant 0 : i32
    %c0_i32_0 = arith.constant 0 : i32
    %c0_i32_1 = arith.constant 0 : i32
    %c0_i32_2 = arith.constant 0 : i32
    return %c0_i32, %c0_i32_0, %c0_i32_1 : i32, i32, i32
  }
  func.func @transform_3(%arg0: i32) -> (i32, i32) {
    %c0_i32 = arith.constant 0 : i32
    %c0_i32_0 = arith.constant 0 : i32
    %c0_i32_1 = arith.constant 0 : i32
    return %c0_i32, %c0_i32_0 : i32, i32
  }
  func.func @transform_4(%arg0: i32) -> (i32, i32) {
    %c0_i32 = arith.constant 0 : i32
    %c0_i32_0 = arith.constant 0 : i32
    %c0_i32_1 = arith.constant 0 : i32
    return %c0_i32, %c0_i32_0 : i32, i32
  }
  func.func @transform_5(%arg0: i32) -> (i32, i32, i32) {
    %c0_i32 = arith.constant 0 : i32
    %c0_i32_0 = arith.constant 0 : i32
    %c0_i32_1 = arith.constant 0 : i32
    return %arg0, %c0_i32, %c0_i32_0 : i32, i32, i32
  }
}

</mosaic_0001>

<bundles_post_ra>
// kernel: conv2d_bn_tanh.3
= control target key start
LH: loop header
LB: loop body
LE: loop exit
PB: predicated region body
PF: predicated region fallthrough
CT: control target
= control target key end

     0   :  { %s392_s18 = smov 0   ;;  %s431_s0 = inlined_call_operand.vmem [shape: bf16[2,8,256], index: 0, kind: input, shape index: {}]   ;;  %s432_s1 = inlined_call_operand.vmem [shape: f32[2,8,1], index: 1, kind: input, shape index: {}]   ;;  %s433_s2 = inlined_call_operand.vmem [shape: f32[2,8,1], index: 2, kind: input, shape index: {}]   ;;  %s434_s3 = inlined_call_operand.vmem [shape: f32[8,1], index: 3, kind: input, shape index: {}]   ;;  %s435_s4 = inlined_call_operand.vmem [shape: f32[8,1], index: 4, kind: input, shape index: {}]   ;;  %s436_s5 = inlined_call_operand.vmem [shape: f32[2,8,256], index: 5, kind: output, shape index: {}]  }
   0x1 LB: > { %s324_s19 = sadd.s32 4294967295, %s359_s18   ;;  %p328_p0 = scmp.ge.s32.totalorder %s359_s18, 1  ;;  %s359_s18 = sphi %s392_s18, %s15_s18  }
   0x2   : > { %p187_p1 = scmp.lt.s32.totalorder %s359_s18, 3 }
   0x4   : > { %p188_p2 = pnand %p328_p0, %p187_p1 }
   0x5   : > { %p215_p3 = scmp.lt.s32.totalorder (!%p188_p2), %s324_s19, 1 }
   0x6   : > { %191 = sbr.rel (%p188_p2) target bundleno = 187 (0xbb), region = 40 }
   0xb   : > { %v225_v0 = vld [vmem:[%s432_s1] sm:$0xff]  ;;  %v226_v1 = vld [vmem:[%s432_s1 + $0x8] sm:$0xff]  ;;  %vm227_vm0 = vcmask 7168   ;;  %v361_v3 = vmov 0   ;;  %s438_s19 = smov (!%p215_p3, %s324_s19), 1 }
   0xc   : > { %v232_v2 = vld [vmem:[%s433_s2] sm:$0xff]  ;;  %346 = vset.pattern.permute.xlu0 %v361_v3  ;;  %v228_v4 = vsel %vm227_vm0, %v225_v0, 0.0  ;;  %v229_v5 = vsel %vm227_vm0, %v226_v1, 0.0  ;;  %v233_v6 = vld [vmem:[%s433_s2 + $0x8] sm:$0xff]  ;;  %s335_s7 = sshll.u32 %s438_s19, 3  ;;  %s336_s11 = sshll.u32 %s438_s19, 4 }
   0xd   : > { %v234_v7 = vsel %vm227_vm0, %v232_v2, 0.0  ;;  %v230_v8 = vadd.f32 %v229_v5, %v228_v4  ;;  %v235_v9 = vsel %vm227_vm0, %v233_v6, 0.0  ;;  %v241_v17 = vld [vmem:[%s434_s3] sm:$0xff]  ;;  %s219_s10 = scalar_lea.vmem %s431_s0, %s335_s7  ;;  %s224_s14 = scalar_lea.vmem %s436_s5, %s336_s11 }
   0xe   : > { %v236_v10 = vadd.f32 %v235_v9, %v234_v7  ;;  %v245_v20 = vld [vmem:[%s435_s4] sm:$0xff] }
   0xf   : > { %v231_v11 = vmul.f32 0.001953125, %v230_v8  ;;  %v248_v23 = vld [vmem:[%s219_s10] sm:$0xff] }
  0x10   : > { %v237_v12 = vmul.f32 0.001953125, %v236_v10  ;;  %v249_v24 = vunpack.c.l.bf16 %v248_v23  ;;  %v250_v25 = vunpack.c.h.bf16 %v248_v23 }
  0x11   : > { %v238_v13 = vmul.f32 %v231_v11, %v231_v11 }
  0x13   : > { %v239_v14 = vsub.f32 %v237_v12, %v238_v13 }
  0x15   : > { %v240_v15 = vmax.f32 %v239_v14, 0.0 }
  0x17   : > { %v242_v16 = vadd.f32 1e-05, %v240_v15 }
  0x19   : > { %347 = vrsqrt.f32 %v242_v16 }
  0x26   : > { %v348_v18 = vpop.eup %347 }
  0x27   : > { %v244_v19 = vmul.f32 %v348_v18, %v241_v17 }
  0x29   : > { %253 = vperm.xlu0 %346, %v244_v19   ;;  %v246_v21 = vmul.f32 %v244_v19, %v231_v11 }
  0x2b   : > { %v247_v22 = vsub.f32 %v245_v20, %v246_v21 }
  0x2d   : > { %260 = vperm.xlu0 %346, %v247_v22  }
  0xa4   : > { %v254_v26 = vpop.permute.xlu0 %253 }
  0xa5   : > { %v256_v27 = vmul.f32 %v254_v26, %v249_v24  ;;  %v257_v28 = vmul.f32 %v254_v26, %v250_v25 }
  0xa8   : > { %v261_v29 = vpop.permute.xlu0 %260 }
  0xa9   : > { %v263_v30 = vadd.f32 %v261_v29, %v256_v27  ;;  %v264_v31 = vadd.f32 %v261_v29, %v257_v28 }
  0xab   : > { %349 = vtanh.f32 %v263_v30 }
  0xac   : > { %351 = vtanh.f32 %v264_v31 }
  0xb8   : > { %v350_v32 = vpop.eup %349 }
  0xb9   : > { %v352_v33 = vpop.eup %351  ;;  %267 = vst [vmem:[%s224_s14] sm:$0xff] %v350_v32 }
  0xba   : > { %268 = vst [vmem:[%s224_s14 + $0x8] sm:$0xff] %v352_v33 }
  0xbb PF: > { %s15_s18 = sadd.s32 1, %s359_s18  }
  0xbc   : > { %p12_p4 = scmp.ge.s32.totalorder %s15_s18, 4  }
  0xbe   :  { %14 = sbr.rel (!%p12_p4) target bundleno = 1 (0x1), region = 70 }

// kernel: conv2d_bn_tanh.2
= control target key start
LH: loop header
LB: loop body
LE: loop exit
PB: predicated region body
PF: predicated region fallthrough
CT: control target
= control target key end

     0   :  { %s996_s15 = smov 0   ;;  %s1091_s0 = inlined_call_operand.vmem [shape: bf16[2,4,384], index: 0, kind: input, shape index: {}]   ;;  %s1092_s1 = inlined_call_operand.vmem [shape: bf16[8,36], index: 1, kind: input, shape index: {}]   ;;  %s1093_s2 = inlined_call_operand.vmem [shape: bf16[2,8,256], index: 2, kind: output, shape index: {0}]   ;;  %s1094_s3 = inlined_call_operand.vmem [shape: f32[2,8,1], index: 3, kind: output, shape index: {1}]   ;;  %s1095_s4 = inlined_call_operand.vmem [shape: f32[2,8,1], index: 4, kind: output, shape index: {2}]  }
   0x1 LB: > { %s844_s16 = sadd.s32 4294967295, %s945_s15   ;;  %p848_p0 = scmp.ge.s32.totalorder %s945_s15, 1  ;;  %s945_s15 = sphi %s996_s15, %s15_s15  }
   0x2   : > { %p167_p1 = scmp.lt.s32.totalorder %s945_s15, 3 }
   0x4   : > { %p168_p2 = pnand %p848_p0, %p167_p1 }
   0x5   : > { %p201_p3 = scmp.lt.s32.totalorder (!%p168_p2), %s844_s16, 1  ;;  %s948_s21 = smov (!%p168_p2), 90  }
   0x6   : > { %171 = sbr.rel (%p168_p2) target bundleno = 660 (0x294), region = 28  ;;  %s949_s22 = smov (!%p168_p2), 109  }
   0x7   : > { %s950_s23 = smov (!%p168_p2), 92   ;;  %s951_s24 = smov (!%p168_p2), 108  }
   0x8   : > { %s953_s25 = smov (!%p168_p2), 91   ;;  %s954_s26 = smov (!%p168_p2), 127  }
   0x9   : > { %s955_s27 = smov (!%p168_p2), 126   ;;  %s957_s28 = smov (!%p168_p2), 110  }
   0xa   : > { %s959_s5 = smov (!%p168_p2), 100   ;;  %s960_s6 = smov (!%p168_p2), 124  }
   0xb   : > { %v233_v0 = vlaneseq  ;;  %v947_v1 = vmov 1983009808   ;;  %s1097_s16 = smov (!%p201_p3, %s844_s16), 1  ;;  %vm240_vm0 = vcmask 549888   ;;  %v952_v24 = vmov 0.0   ;;  %s961_s7 = smov 122  }
   0xc   : > { %v231_v2 = vunpack.c.l.s4 %v947_v1  ;;  %s886_s17 = smul.u32 6, %s1097_s16  ;;  %876 = vmatprep.subr.bf16.mxu1 %v952_v24  ;;  %vm956_vm1 = vmmov 0   ;;  %v958_v42 = vmov 0   ;;  %vm272_vm2 = vcmask 551938   ;;  %s962_s8 = smov 114  }
   0xd   : > { %v234_v3 = vshrl.u32 %v233_v0, 7  ;;  %882 = vmatprep.mubr.msk.bf16.mxu1 %vm956_vm1, %v952_v24  ;;  %581 = vmatprep.mubr.bf16.mxu0 %v958_v42  ;;  %vm265_vm3 = vcmask 1043456   ;;  %vm478_vm4 = vcmask 736256   ;;  %vm358_vm5 = vcmask 891904   ;;  %s963_s9 = smov 120   ;;  %s964_s10 = smov 118  }
   0xe   : > { %v232_v4 = vunpack.c.0.s8 %v231_v2  ;;  %s1012_s20 = scalar_lea.vmem %s1091_s0, %s886_s17  ;;  %vm388_vm6 = vcmask 883712   ;;  %vm418_vm7 = vcmask 752640   ;;  %vm539_vm8 = vcmask 1041408   ;;  %s965_s11 = smov 116  }
   0xf   : > { %v454_v6 = vld [vmem:[%s1012_s20] sm:$0x3f]  ;;  %vm448_vm9 = vcmask 744448   ;;  %vm267_vm10 = vcmask 1039360   ;;  %vm298_vm11 = vcmask 1031168   ;;  %vm328_vm12 = vcmask 900096  }
  0x10   : > { %v1007_v5 = vsub.s32 %v232_v4, %v234_v3  ;;  %v334_v7 = vld [vmem:[%s1012_s20] sm:$0x3f]  ;;  %v456_v12 = vcombine.high %v454_v6, %v454_v6  ;;  %vm535_vm13 = vcmask 293888   ;;  %s966_s12 = smov 106   ;;  %s967_s13 = smov 112   ;;  %vm686_vm14 = vcmask 130048  }
  0x11   : > { %v394_v8 = vld [vmem:[%s1012_s20] sm:$0x3f]  ;;  %v336_v14 = vcombine.high %v334_v7, %v334_v7  ;;  %s968_s14 = smov 104   ;;  %s969_s17 = smov 102   ;;  %vm688_vm15 = vcmask 261120   ;;  %vm680_vm1 = vcmask 818176  }
  0x12   : > { %v463_v9 = vrot.slane %v454_v6, %v1007_v5  ;;  %v343_v10 = vrot.slane %v334_v7, %v1007_v5  ;;  %v364_v11 = vld [vmem:[%s1012_s20] sm:$0x3f]  ;;  %v403_v15 = vrot.slane %v394_v8, %v1007_v5  ;;  %v470_v19 = vrot.slane %v456_v12, %v1007_v5  ;;  %s970_s18 = smov 98   ;;  %s870_s19 = sshll.u32 %s1097_s16, 3 }
  0x13   : > { %v220_v13 = vld [vmem:[%s1012_s20] sm:$0x3f]  ;;  %v380_v16 = vrot.slane %v364_v11, %v1007_v5  ;;  %v366_v17 = vcombine.low %v364_v11, %v364_v11  ;;  %v350_v20 = vrot.slane %v336_v14, %v1007_v5  ;;  %v396_v21 = vcombine.high %v394_v8, %v394_v8 }
  0x14   : > { %471 = vrot.lane.b32.xlu0 %v463_v9, %s948_s21  ;;  %351 = vrot.lane.b32.xlu1 %v343_v10, %s949_s22  ;;  %854 = vst.sshfl [vmem:[#allocation2] sm:$0xf pattern:$0x76325410] %v220_v13  ;;  %v222_v18 = vcombine.high %v220_v13, %v220_v13  ;;  %v424_v22 = vld [vmem:[%s1012_s20] sm:$0x3f] }
  0x15   : > { %v373_v25 = vrot.slane %v366_v17, %v1007_v5  ;;  %v410_v26 = vrot.slane %v396_v21, %v1007_v5  ;;  %v426_v27 = vcombine.low %v424_v22, %v424_v22  ;;  %v242_v28 = vld [vmem:[%s1012_s20] sm:$0x3f]  ;;  %v440_v30 = vrot.slane %v424_v22, %v1007_v5 }
  0x16   : > { %v236_v23 = vrot.slane %v222_v18, %v1007_v5  ;;  %v244_v31 = vcombine.low %v242_v28, %v242_v28  ;;  %v274_v32 = vld [vmem:[%s1012_s20] sm:$0x3f]  ;;  %v258_v33 = vrot.slane %v242_v28, %v1007_v5 }
  0x17   : > { %v433_v29 = vrot.slane %v426_v27, %v1007_v5  ;;  %v276_v35 = vcombine.high %v274_v32, %v274_v32  ;;  %v304_v36 = vld [vmem:[%s1012_s20] sm:$0x3f]  ;;  %v283_v38 = vrot.slane %v274_v32, %v1007_v5 }
  0x18   : > { %411 = vrot.lane.b32.xlu0 %v403_v15, %s950_s23  ;;  %383 = vrot.lane.b32.xlu1 %v380_v16, %s951_s24  ;;  %241 = vst.msk [vmem:[#allocation2 + $0x8] sm:$0x3] %vm240_vm0, %v236_v23  ;;  %v251_v34 = vrot.slane %v244_v31, %v1007_v5  ;;  %v306_v39 = vcombine.low %v304_v36, %v304_v36 }
  0x19   : > { %v290_v37 = vrot.slane %v276_v35, %v1007_v5  ;;  %v320_v40 = vrot.slane %v304_v36, %v1007_v5 }
  0x1a   : > { %v313_v41 = vrot.slane %v306_v39, %v1007_v5 }
  0x1c   : > { %473 = vrot.lane.b32.xlu0 %v470_v19, %s948_s21  ;;  %353 = vrot.lane.b32.xlu1 %v350_v20, %s949_s22  ;;  %s210_s22 = scalar_lea.vmem %s1093_s2, %s870_s19 }
  0x20   : > { %381 = vrot.lane.b32.xlu0 %v373_v25, %s951_s24  ;;  %413 = vrot.lane.b32.xlu1 %v410_v26, %s950_s23 }
  0x24   : > { %441 = vrot.lane.b32.xlu0 %v433_v29, %s953_s25  ;;  %443 = vrot.lane.b32.xlu1 %v440_v30, %s953_s25 }
  0x28   : > { %261 = vrot.lane.b32.xlu1 %v258_v33, %s954_s26  ;;  %259 = vrot.lane.b32.xlu0 %v251_v34, %s954_s26 }
  0x2c   : > { %293 = vrot.lane.b32.xlu1 %v290_v37, %s955_s27  ;;  %291 = vrot.lane.b32.xlu0 %v283_v38, %s955_s27 }
  0x30   : > { %323 = vrot.lane.b32.xlu1 %v320_v40, %s957_s28  ;;  %321 = vrot.lane.b32.xlu0 %v313_v41, %s957_s28 }
  0x86   : > { %v472_v43 = vpop.permute.xlu0 %471  ;;  %v352_v44 = vpop.permute.xlu1 %351 }
  0x87   : > { %v475_v49 = vrot.slane %v472_v43, 4  ;;  %v355_v50 = vrot.slane %v352_v44, 4 }
  0x8a   : > { %v412_v45 = vpop.permute.xlu0 %411  ;;  %v384_v46 = vpop.permute.xlu1 %383 }
  0x8b   : > { %393 = vst.msk [vmem:[#allocation2 + $0x20] sm:$0xc] %vm272_vm2, %v384_v46  ;;  %v415_v59 = vrot.slane %v412_v45, 4  ;;  %v386_v60 = vrot.slane %v384_v46, 4 }
  0x8e   : > { %v474_v47 = vpop.permute.xlu0 %473  ;;  %v354_v48 = vpop.permute.xlu1 %353 }
  0x8f   : > { %v476_v51 = vrot.slane %v474_v47, 4  ;;  %483 = vst.msk [vmem:[#allocation2 + $0x38] sm:$0x3] %vm240_vm0, %v474_v47  ;;  %v356_v52 = vrot.slane %v354_v48, 4  ;;  %363 = vst.msk [vmem:[#allocation2 + $0x20] sm:$0x3] %vm240_vm0, %v354_v48 }
  0x91   : > { %v477_v53 = vsel %vm265_vm3, %v475_v49, %v476_v51  ;;  %v357_v54 = vsel %vm265_vm3, %v355_v50, %v356_v52 }
  0x92   : > { %v479_v55 = vsel %vm478_vm4, %v472_v43, %v477_v53  ;;  %v359_v56 = vsel %vm358_vm5, %v352_v44, %v357_v54  ;;  %v382_v57 = vpop.permute.xlu0 %381  ;;  %v414_v58 = vpop.permute.xlu1 %413  ;;  %vm696_vm4 = vcmask 785408   ;;  %vm654_vm5 = vcmask 932864  }
  0x93   : > { %482 = vst [vmem:[#allocation2 + $0x30] sm:$0x33] %v479_v55  ;;  %362 = vst [vmem:[#allocation2 + $0x18] sm:$0x33] %v359_v56  ;;  %v385_v61 = vrot.slane %v382_v57, 4  ;;  %v416_v62 = vrot.slane %v414_v58, 4 }
  0x94   : > { %423 = vst.msk [vmem:[#allocation2 + $0x2c] sm:$0x3] %vm240_vm0, %v414_v58 }
  0x95   : > { %v387_v63 = vsel %vm265_vm3, %v385_v61, %v386_v60  ;;  %v417_v0 = vsel %vm265_vm3, %v415_v59, %v416_v62 }
  0x96   : > { %v389_v1 = vsel %vm388_vm6, %v382_v57, %v387_v63  ;;  %v419_v2 = vsel %vm418_vm7, %v412_v45, %v417_v0  ;;  %v442_v3 = vpop.permute.xlu0 %441  ;;  %v444_v4 = vpop.permute.xlu1 %443  ;;  %v928_v5 = vld [vmem:[#allocation2 + $0x38] ss:$0 sps:$4 sm:$0x33]   ;;  %vm698_vm6 = vcmask 916480   ;;  %vm719_vm7 = vcmask 7168  }
  0x97   : > { %392 = vst [vmem:[#allocation2 + $0x18] sm:$0xcc] %v389_v1  ;;  %422 = vst [vmem:[#allocation2 + $0x24] sm:$0x33] %v419_v2  ;;  %v445_v6 = vrot.slane %v442_v3, 4  ;;  %v446_v7 = vrot.slane %v444_v4, 4 }
  0x98   : > { %453 = vst.msk [vmem:[#allocation2 + $0x2c] sm:$0xc] %vm272_vm2, %v444_v4  ;;  %v547_v8 = vsel %vm539_vm8, %v928_v5, 0 }
  0x99   : > { %v447_v9 = vsel %vm265_vm3, %v445_v6, %v446_v7  ;;  %877 = vmatpush3.bf16.msra.mxu1 %v547_v8 }
  0x9a   : > { %v449_v10 = vsel %vm448_vm9, %v442_v3, %v447_v9  ;;  %v262_v11 = vpop.permute.xlu1 %261  ;;  %v260_v12 = vpop.permute.xlu0 %259  ;;  %v493_v13 = vld [vmem:[#allocation2 + $0x30] sm:$0x33]  ;;  %878 = vmatprep.subr.bf16.mxu1 %v952_v24 }
  0x9b   : > { %452 = vst [vmem:[#allocation2 + $0x24] sm:$0xcc] %v449_v10  ;;  %v264_v14 = vrot.slane %v262_v11, 4  ;;  %273 = vst.msk [vmem:[#allocation2 + $0x8] sm:$0xc] %vm272_vm2, %v262_v11  ;;  %v263_v15 = vrot.slane %v260_v12, 4  ;;  %v862_v16 = vcombine.high %v493_v13, %v493_v13  ;;  %v861_v17 = vcombine.low %v493_v13, %v493_v13 }
  0x9d   : > { %v266_v18 = vsel %vm265_vm3, %v263_v15, %v264_v14  ;;  %864 = vmatprep.subr.msk.bf16.mxu0 %vm539_vm8, %v862_v16  ;;  %v541_v19 = vsel %vm539_vm8, %v861_v17, 0 }
  0x9e   : > { %v268_v20 = vsel %vm267_vm10, %v260_v12, %v266_v18  ;;  %560 = vmatpush1.bf16.msra.mxu0 %v541_v19  ;;  %v294_v21 = vpop.permute.xlu1 %293  ;;  %v292_v22 = vpop.permute.xlu0 %291 }
  0x9f   : > { %v931_v23 = vld [vmem:[#allocation2 + $0x20] ss:$12 sps:$4 sm:$0xff]   ;;  %271 = vst [vmem:[#allocation2] sm:$0xcc] %v268_v20  ;;  %v296_v25 = vrot.slane %v294_v21, 4  ;;  %v295_v26 = vrot.slane %v292_v22, 4 }
  0xa0   : > { %303 = vst.msk [vmem:[#allocation2 + $0x14] sm:$0x3] %vm240_vm0, %v294_v21  ;;  %879 = vmatpush3.bf16.msra.mxu1 %v931_v23  ;;  %vm690_vm0 = vcmask 392192  }
  0xa1   : > { %v297_v27 = vsel %vm265_vm3, %v295_v26, %v296_v25  ;;  %880 = vmatprep.subr.bf16.mxu1 %v952_v24  ;;  %v484_v24 = vld [vmem:[%s1092_s1] sm:$0xf] }
  0xa2   : > { %v299_v28 = vsel %vm298_vm11, %v292_v22, %v297_v27  ;;  %v324_v29 = vpop.permute.xlu1 %323  ;;  %v322_v30 = vpop.permute.xlu0 %321  ;;  %v932_v31 = vld [vmem:[#allocation2 + $0x1c] ss:$12 sps:$4 sm:$0xff]   ;;  %v934_v32 = vld [vmem:[#allocation2 + $0x18] ss:$12 sps:$4 sm:$0xff]  }
  0xa3   : > { %302 = vst [vmem:[#allocation2 + $0xc] sm:$0x33] %v299_v28  ;;  %v326_v33 = vrot.slane %v324_v29, 4  ;;  %333 = vst.msk [vmem:[#allocation2 + $0x14] sm:$0xc] %vm272_vm2, %v324_v29  ;;  %v325_v34 = vrot.slane %v322_v30, 4  ;;  %561 = vmatprep.subr.bf16.mxu0 %v932_v31 }
  0xa4   : > { %562 = vmatpush1.bf16.msra.mxu0 %v934_v32  ;;  %vm692_vm2 = vcmask 523264  }
  0xa5   : > { %v327_v35 = vsel %vm265_vm3, %v325_v34, %v326_v33  ;;  %vm694_vm3 = vcmask 654336  }
  0xa6   : > { %v329_v36 = vsel %vm328_vm12, %v322_v30, %v327_v35 }
  0xa7   : > { %332 = vst [vmem:[#allocation2 + $0xc] sm:$0xcc] %v329_v36 }
  0xaa   : > { %v935_v37 = vld [vmem:[#allocation2 + $0x8] ss:$12 sps:$4 sm:$0xff]  }
  0xab   : > { %881 = vmatpush3.bf16.msra.mxu1 %v935_v37 }
  0xae   : > { %v936_v38 = vld [vmem:[#allocation2 + $0x4] ss:$12 sps:$4 sm:$0xff]   ;;  %v938_v39 = vld [vmem:[#allocation2] ss:$12 sps:$4 sm:$0xff]   ;;  %883 = vmatmul.mubr.msk.bf16.vlgmr.msra.gmra.mxu1 %vm535_vm13, %v484_v24 }
  0xaf   : > { %563 = vmatprep.subr.bf16.mxu0 %v936_v38 }
  0xb0   : > { %564 = vmatpush1.bf16.msra.mxu0 %v938_v39 }
  0xb3   : > { %865 = vmatmul.mubr.msk.bf16.vlgmr.msra.gmra.mxu0 %vm535_vm13, %v484_v24 }
 0x16e   : > { %v624_v40 = vpop.f32.mrf.mxu1 }
 0x16f   : > { %678 = vrot.lane.b32.xlu0 %v624_v40, %s959_s5 }
 0x170   : > { %v884_v41 = vpop.f32.mrf.mxu1 }
 0x172   : > { %v627_v42 = vpop.f32.mrf.mxu1 }
 0x173   : > { %v583_v43 = vpop.f32.mrf.mxu0 }
 0x174   : > { %634 = vrot.lane.b32.xlu1 %v583_v43, %s960_s6  ;;  %631 = vrot.lane.b32.xlu0 %v583_v43, %s955_s27  ;;  %v885_v44 = vpop.f32.mrf.mxu1  ;;  %s218_s27 = scalar_lea.vmem %s1095_s4, %s870_s19 }
 0x175   : > { %v585_v45 = vpop.f32.mrf.mxu0 }
 0x177   : > { %v587_v46 = vpop.f32.mrf.mxu0 }
 0x178   : > { %637 = vrot.lane.b32.xlu1 %v583_v43, %s961_s7  ;;  %650 = vrot.lane.b32.xlu0 %v583_v43, %s962_s8 }
 0x179   : > { %v588_v47 = vpop.f32.mrf.mxu0 }
 0x17c   : > { %640 = vrot.lane.b32.xlu1 %v583_v43, %s963_s9  ;;  %660 = vrot.lane.b32.xlu0 %v585_v45, %s957_s28 }
 0x180   : > { %643 = vrot.lane.b32.xlu1 %v583_v43, %s964_s10  ;;  %663 = vrot.lane.b32.xlu0 %v585_v45, %s951_s24  ;;  %s214_s24 = scalar_lea.vmem %s1094_s3, %s870_s19 }
 0x184   : > { %646 = vrot.lane.b32.xlu1 %v583_v43, %s965_s11  ;;  %666 = vrot.lane.b32.xlu0 %v585_v45, %s966_s12 }
 0x188   : > { %657 = vrot.lane.b32.xlu1 %v585_v45, %s967_s13  ;;  %669 = vrot.lane.b32.xlu0 %v585_v45, %s968_s14 }
 0x18c   : > { %676 = vrot.lane.b32.xlu1 %v585_v45, %s959_s5  ;;  %672 = vrot.lane.b32.xlu0 %v585_v45, %s969_s17 }
 0x190   : > { %652 = vrot.lane.b32.xlu1 %v585_v45, %s962_s8  ;;  %683 = vrot.lane.b32.xlu0 %v624_v40, %s970_s18 }
 0x1e1   : > { %v679_v48 = vpop.permute.xlu0 %678 }
 0x1e6   : > { %v635_v49 = vpop.permute.xlu1 %634  ;;  %v632_v50 = vpop.permute.xlu0 %631 }
 0x1e7   : > { %v687_v62 = vsel %vm686_vm14, %v583_v43, %v632_v50 }
 0x1e8   : > { %v689_v4 = vsel %vm688_vm15, %v687_v62, %v635_v49 }
 0x1ea   : > { %v638_v51 = vpop.permute.xlu1 %637  ;;  %v651_v52 = vpop.permute.xlu0 %650 }
 0x1eb   : > { %v691_v7 = vsel %vm690_vm0, %v689_v4, %v638_v51 }
 0x1ee   : > { %v641_v53 = vpop.permute.xlu1 %640  ;;  %v661_v54 = vpop.permute.xlu0 %660 }
 0x1ef   : > { %v693_v8 = vsel %vm692_vm2, %v691_v7, %v641_v53 }
 0x1f2   : > { %v644_v55 = vpop.permute.xlu1 %643  ;;  %v664_v56 = vpop.permute.xlu0 %663 }
 0x1f3   : > { %v695_v9 = vsel %vm694_vm3, %v693_v8, %v644_v55 }
 0x1f6   : > { %v647_v57 = vpop.permute.xlu1 %646  ;;  %v667_v58 = vpop.permute.xlu0 %666 }
 0x1f7   : > { %v697_v13 = vsel %vm696_vm4, %v695_v9, %v647_v57 }
 0x1fa   : > { %v658_v59 = vpop.permute.xlu1 %657  ;;  %v670_v60 = vpop.permute.xlu0 %669 }
 0x1fb   : > { %v700_v61 = vsel %vm686_vm14, %v658_v59, %v661_v54 }
 0x1fc   : > { %v701_v63 = vsel %vm688_vm15, %v700_v61, %v664_v56 }
 0x1fd   : > { %v702_v0 = vsel %vm690_vm0, %v701_v63, %v667_v58 }
 0x1fe   : > { %v703_v1 = vsel %vm692_vm2, %v702_v0, %v670_v60  ;;  %v677_v2 = vpop.permute.xlu1 %676  ;;  %v673_v3 = vpop.permute.xlu0 %672 }
 0x1ff   : > { %v681_v5 = vsel %vm680_vm1, %v677_v2, %v679_v48  ;;  %v704_v6 = vsel %vm694_vm3, %v703_v1, %v673_v3 }
 0x200   : > { %v705_v11 = vsel %vm696_vm4, %v704_v6, %v681_v5 }
 0x202   : > { %v653_v10 = vpop.permute.xlu1 %652  ;;  %v684_v12 = vpop.permute.xlu0 %683 }
 0x203   : > { %v655_v14 = vsel %vm654_vm5, %v651_v52, %v653_v10  ;;  %v706_v15 = vsel %vm698_vm6, %v705_v11, %v684_v12 }
 0x204   : > { %v699_v16 = vsel %vm698_vm6, %v697_v13, %v655_v14  ;;  %v722_v17 = vmul.f32 %v706_v15, %v706_v15 }
 0x205   : > { %v716_v18 = vadd.f32 %v706_v15, %v699_v16  ;;  %v871_v19 = vpack.c.bf16 %v706_v15, %v699_v16  ;;  %v721_v20 = vmul.f32 %v699_v16, %v699_v16 }
 0x207   : > { %717 = vadd.xlane.f32.xlu1 %v716_v18  ;;  %715 = vst [vmem:[%s210_s22] sm:$0xff] %v871_v19  ;;  %v723_v21 = vadd.f32 %v722_v17, %v721_v20 }
 0x209   : > { %724 = vadd.xlane.f32.xlu0 %v723_v21 }
 0x290   : > { %v718_v22 = vpop.xlane.xlu1 %717 }
 0x291   : > { %720 = vst.msk [vmem:[%s214_s24] sm:$0xff] %vm719_vm7, %v718_v22 }
 0x292   : > { %v725_v23 = vpop.xlane.xlu0 %724 }
 0x293   : > { %726 = vst.msk [vmem:[%s218_s27] sm:$0xff] %vm719_vm7, %v725_v23 }
 0x294 PF: > { %s15_s15 = sadd.s32 1, %s945_s15  }
 0x295   : > { %p12_p4 = scmp.ge.s32.totalorder %s15_s15, 4  }
 0x297   :  { %14 = sbr.rel (!%p12_p4) target bundleno = 1 (0x1), region = 82 }

</bundles_post_ra>
